<compile_context>
chip_gen: v7x
topology: tpu7x:2x2x1
jax: 0.10.0
libtpu: 0.0.40
codegen_flags: <defaults>
</compile_context>

<pallas_src>
import functools

import jax
import jax.numpy as jnp
from jax.experimental import pallas as pl
from jax.experimental.pallas import tpu as pltpu


def _dcgt_kernel(l_pred_ref, r_pred_ref, l_fm_ref, r_fm_ref,
                 l_gt_ref, r_gt_ref, bb_ref, *, thr):
    # flawmaps: (1, 1, S, L), preds: (1, C, S, L)
    l_tmp = l_fm_ref[...].astype(jnp.float32)
    r_tmp = r_fm_ref[...].astype(jnp.float32)

    l_bad = l_tmp > thr
    r_bad = r_tmp > thr
    bb_ref[...] = jnp.logical_and(l_bad, r_bad).astype(bb_ref.dtype)

    # handled = flawmap where <= thr, else 1.0
    l_handled = jnp.where(l_bad, jnp.float32(1.0), l_tmp)
    r_handled = jnp.where(r_bad, jnp.float32(1.0), r_tmp)

    l_sel = r_handled >= l_handled   # (1, 1, S, L) bool
    r_sel = l_handled >= r_handled   # (1, 1, S, L) bool

    l_pred = l_pred_ref[...]         # (1, C, S, L)
    r_pred = r_pred_ref[...]

    # boolean select; predicate broadcasts over the C axis
    l_gt_ref[...] = jnp.where(l_sel, l_pred, r_pred)
    r_gt_ref[...] = jnp.where(r_sel, r_pred, l_pred)


def _pick_row_tile(rows):
    """Largest sublane tile (multiple of 8) dividing `rows`, else full extent."""
    if rows % 8 != 0:
        return rows
    for s in (256, 128, 64, 32, 16, 8):
        if rows % s == 0:
            return s
    return rows


def dcgt_generator(l_pred, r_pred, l_handled_flawmap, r_handled_flawmap,
                   dc_threshold=0.5):
    """Pallas implementation of DCGTGenerator.forward.

    Args (all NCHW):
      l_pred, r_pred:                       (N, C, H, W)
      l_handled_flawmap, r_handled_flawmap: (N, 1, H, W)
    Returns:
      (l_dc_gt, r_dc_gt, both_bad, both_bad)  matching the PyTorch module.
    """
    N, C, H, W = l_pred.shape
    HW = H * W
    assert l_handled_flawmap.shape == (N, 1, H, W)
    assert r_handled_flawmap.shape == (N, 1, H, W)

    pred_dtype = l_pred.dtype

    # Lane-dense layout: (..., rows, 128) when possible.
    lanes = 128 if HW % 128 == 0 else HW
    rows = HW // lanes
    S = _pick_row_tile(rows)
    n_tiles = rows // S

    lp = l_pred.reshape(N, C, rows, lanes)
    rp = r_pred.reshape(N, C, rows, lanes)
    lf = l_handled_flawmap.reshape(N, 1, rows, lanes)
    rf = r_handled_flawmap.reshape(N, 1, rows, lanes)

    pred_spec = pl.BlockSpec((1, C, S, lanes), lambda n, s: (n, 0, s, 0))
    fm_spec = pl.BlockSpec((1, 1, S, lanes), lambda n, s: (n, 0, s, 0))

    out_shapes = (
        jax.ShapeDtypeStruct((N, C, rows, lanes), pred_dtype),   # l_dc_gt
        jax.ShapeDtypeStruct((N, C, rows, lanes), pred_dtype),   # r_dc_gt
        jax.ShapeDtypeStruct((N, 1, rows, lanes), jnp.float32),  # both_bad
    )

    kernel = functools.partial(_dcgt_kernel, thr=float(dc_threshold))

    itemsize = jnp.dtype(pred_dtype).itemsize
    cost = pl.CostEstimate(
        flops=10 * N * C * HW,
        transcendentals=0,
        bytes_accessed=(4 * C + 2) * N * HW * itemsize + 3 * N * HW * 4,
    )

    l_gt, r_gt, bb = pl.pallas_call(
        kernel,
        out_shape=out_shapes,
        grid_spec=pltpu.PrefetchScalarGridSpec(
            num_scalar_prefetch=0,
            grid=(N, n_tiles),
            in_specs=[pred_spec, pred_spec, fm_spec, fm_spec],
            out_specs=[pred_spec, pred_spec, fm_spec],
        ),
        compiler_params=pltpu.CompilerParams(
            dimension_semantics=("parallel", "parallel")),
        cost_estimate=cost,
    )(lp, rp, lf, rf)

    l_gt = l_gt.reshape(N, C, H, W)
    r_gt = r_gt.reshape(N, C, H, W)
    bb = bb.reshape(N, 1, H, W)
    # PyTorch module returns the same both_bad tensor twice.
    return l_gt, r_gt, bb, bb


def _reference(l_pred, r_pred, l_fm, r_fm, thr):
    """Pure-JAX reference mirroring the PyTorch forward."""
    l_tmp, r_tmp = l_fm.astype(jnp.float32), r_fm.astype(jnp.float32)
    l_bad = l_tmp > thr
    r_bad = r_tmp > thr
    both_bad = jnp.logical_and(l_bad, r_bad).astype(jnp.float32)
    l_h = l_tmp * (l_tmp <= thr) + (l_tmp > thr)
    r_h = r_tmp * (r_tmp <= thr) + (r_tmp > thr)
    l_mask = (r_h >= l_h)
    r_mask = (l_h >= r_h)
    l_dc_gt = jnp.where(l_mask, l_pred, r_pred)
    r_dc_gt = jnp.where(r_mask, r_pred, l_pred)
    return l_dc_gt, r_dc_gt, both_bad, both_bad


if __name__ == "__main__":
    key = jax.random.PRNGKey(0)
    k1, k2, k3, k4 = jax.random.split(key, 4)

    N, C, H, W = 2, 4, 16, 16
    dc_threshold = 0.5

    l_pred = jax.random.uniform(k1, (N, C, H, W), dtype=jnp.float32)
    r_pred = jax.random.uniform(k2, (N, C, H, W), dtype=jnp.float32)
    l_flaw = jax.random.uniform(k3, (N, 1, H, W), dtype=jnp.float32)
    r_flaw = jax.random.uniform(k4, (N, 1, H, W), dtype=jnp.float32)

    outs = dcgt_generator(l_pred, r_pred, l_flaw, r_flaw, dc_threshold)
    outs = jax.block_until_ready(outs)

    refs = _reference(l_pred, r_pred, l_flaw, r_flaw, dc_threshold)
    for o, r in zip(outs, refs):
        assert o.shape == r.shape and o.dtype == r.dtype, (o.shape, r.shape)
        assert jnp.allclose(o, r, atol=1e-6), "mismatch vs reference"

    print("KERNEL_OK")
</pallas_src>

<mosaic_0001>
module attributes {stable_mosaic.version = 11 : i64} {
  func.func @_dcgt_kernel(%arg0: i32, %arg1: i32, %arg2: memref<1x4x2x128xf32, #tpu.memory_space<vmem>>, %arg3: memref<1x4x2x128xf32, #tpu.memory_space<vmem>>, %arg4: memref<1x1x2x128xf32, #tpu.memory_space<vmem>>, %arg5: memref<1x1x2x128xf32, #tpu.memory_space<vmem>>, %arg6: memref<1x4x2x128xf32, #tpu.memory_space<vmem>>, %arg7: memref<1x4x2x128xf32, #tpu.memory_space<vmem>>, %arg8: memref<1x1x2x128xf32, #tpu.memory_space<vmem>>) attributes {dimension_semantics = [#tpu.dimension_semantics<parallel>, #tpu.dimension_semantics<parallel>], iteration_bounds = array<i64: 2, 1>, scalar_prefetch = 0 : i64, scratch_operands = 0 : i64, tpu.core_type = #tpu.core_type<tc>, window_params = [{transform_indices = @transform_0, window_bounds = array<i64: 1, 4, 2, 128>}, {transform_indices = @transform_1, window_bounds = array<i64: 1, 4, 2, 128>}, {transform_indices = @transform_2, window_bounds = array<i64: 1, 1, 2, 128>}, {transform_indices = @transform_3, window_bounds = array<i64: 1, 1, 2, 128>}, {transform_indices = @transform_4, window_bounds = array<i64: 1, 4, 2, 128>}, {transform_indices = @transform_5, window_bounds = array<i64: 1, 4, 2, 128>}, {transform_indices = @transform_6, window_bounds = array<i64: 1, 1, 2, 128>}]} {
    %c0 = arith.constant 0 : index
    %c0_0 = arith.constant 0 : index
    %c0_1 = arith.constant 0 : index
    %c0_2 = arith.constant 0 : index
    %0 = vector.load %arg4[%c0, %c0_0, %c0_1, %c0_2] : memref<1x1x2x128xf32, #tpu.memory_space<vmem>>, vector<1x1x2x128xf32>
    %c0_3 = arith.constant 0 : index
    %c0_4 = arith.constant 0 : index
    %c0_5 = arith.constant 0 : index
    %c0_6 = arith.constant 0 : index
    %1 = vector.load %arg5[%c0_3, %c0_4, %c0_5, %c0_6] : memref<1x1x2x128xf32, #tpu.memory_space<vmem>>, vector<1x1x2x128xf32>
    %cst = arith.constant 5.000000e-01 : f32
    %2 = vector.broadcast %cst : f32 to vector<1x1x2x128xf32>
    %3 = arith.cmpf ogt, %0, %2 : vector<1x1x2x128xf32>
    %cst_7 = arith.constant 5.000000e-01 : f32
    %4 = vector.broadcast %cst_7 : f32 to vector<1x1x2x128xf32>
    %5 = arith.cmpf ogt, %1, %4 : vector<1x1x2x128xf32>
    %6 = arith.andi %3, %5 : vector<1x1x2x128xi1>
    %7 = arith.extui %6 : vector<1x1x2x128xi1> to vector<1x1x2x128xi32>
    %8 = arith.sitofp %7 : vector<1x1x2x128xi32> to vector<1x1x2x128xf32>
    %c0_8 = arith.constant 0 : index
    %c0_9 = arith.constant 0 : index
    %c0_10 = arith.constant 0 : index
    %c0_11 = arith.constant 0 : index
    %9 = vector.load %arg8[%c0_8, %c0_9, %c0_10, %c0_11] : memref<1x1x2x128xf32, #tpu.memory_space<vmem>>, vector<1x1x2x128xf32>
    tpu.vector_store %arg8[%c0_8, %c0_9, %c0_10, %c0_11], %8 {strides = array<i32>} : memref<1x1x2x128xf32, #tpu.memory_space<vmem>>, vector<1x1x2x128xf32>,
    %cst_12 = arith.constant 1.000000e+00 : f32
    %10 = vector.broadcast %cst_12 : f32 to vector<1x1x2x128xf32>
    %11 = arith.select %3, %10, %0 : vector<1x1x2x128xi1>, vector<1x1x2x128xf32>
    %cst_13 = arith.constant 1.000000e+00 : f32
    %12 = vector.broadcast %cst_13 : f32 to vector<1x1x2x128xf32>
    %13 = arith.select %5, %12, %1 : vector<1x1x2x128xi1>, vector<1x1x2x128xf32>
    %14 = arith.cmpf oge, %13, %11 : vector<1x1x2x128xf32>
    %15 = arith.cmpf oge, %11, %13 : vector<1x1x2x128xf32>
    %c0_14 = arith.constant 0 : index
    %c0_15 = arith.constant 0 : index
    %c0_16 = arith.constant 0 : index
    %c0_17 = arith.constant 0 : index
    %16 = vector.load %arg2[%c0_14, %c0_15, %c0_16, %c0_17] : memref<1x4x2x128xf32, #tpu.memory_space<vmem>>, vector<1x4x2x128xf32>
    %c0_18 = arith.constant 0 : index
    %c0_19 = arith.constant 0 : index
    %c0_20 = arith.constant 0 : index
    %c0_21 = arith.constant 0 : index
    %17 = vector.load %arg3[%c0_18, %c0_19, %c0_20, %c0_21] : memref<1x4x2x128xf32, #tpu.memory_space<vmem>>, vector<1x4x2x128xf32>
    %18 = vector.shape_cast %14 : vector<1x1x2x128xi1> to vector<1x1x2x128xi1>
    %19 = vector.broadcast %18 : vector<1x1x2x128xi1> to vector<1x4x2x128xi1>
    %20 = arith.select %19, %16, %17 : vector<1x4x2x128xi1>, vector<1x4x2x128xf32>
    %c0_22 = arith.constant 0 : index
    %c0_23 = arith.constant 0 : index
    %c0_24 = arith.constant 0 : index
    %c0_25 = arith.constant 0 : index
    %21 = vector.load %arg6[%c0_22, %c0_23, %c0_24, %c0_25] : memref<1x4x2x128xf32, #tpu.memory_space<vmem>>, vector<1x4x2x128xf32>
    tpu.vector_store %arg6[%c0_22, %c0_23, %c0_24, %c0_25], %20 {strides = array<i32>} : memref<1x4x2x128xf32, #tpu.memory_space<vmem>>, vector<1x4x2x128xf32>,
    %22 = vector.shape_cast %15 : vector<1x1x2x128xi1> to vector<1x1x2x128xi1>
    %23 = vector.broadcast %22 : vector<1x1x2x128xi1> to vector<1x4x2x128xi1>
    %24 = arith.select %23, %17, %16 : vector<1x4x2x128xi1>, vector<1x4x2x128xf32>
    %c0_26 = arith.constant 0 : index
    %c0_27 = arith.constant 0 : index
    %c0_28 = arith.constant 0 : index
    %c0_29 = arith.constant 0 : index
    %25 = vector.load %arg7[%c0_26, %c0_27, %c0_28, %c0_29] : memref<1x4x2x128xf32, #tpu.memory_space<vmem>>, vector<1x4x2x128xf32>
    tpu.vector_store %arg7[%c0_26, %c0_27, %c0_28, %c0_29], %24 {strides = array<i32>} : memref<1x4x2x128xf32, #tpu.memory_space<vmem>>, vector<1x4x2x128xf32>,
    return
  }
  func.func @transform_0(%arg0: i32, %arg1: i32) -> (i32, i32, i32, i32) {
    %c0_i32 = arith.constant 0 : i32
    %c0_i32_0 = arith.constant 0 : i32
    %c0_i32_1 = arith.constant 0 : i32
    return %arg0, %c0_i32, %arg1, %c0_i32_0 : i32, i32, i32, i32
  }
  func.func @transform_1(%arg0: i32, %arg1: i32) -> (i32, i32, i32, i32) {
    %c0_i32 = arith.constant 0 : i32
    %c0_i32_0 = arith.constant 0 : i32
    %c0_i32_1 = arith.constant 0 : i32
    return %arg0, %c0_i32, %arg1, %c0_i32_0 : i32, i32, i32, i32
  }
  func.func @transform_2(%arg0: i32, %arg1: i32) -> (i32, i32, i32, i32) {
    %c0_i32 = arith.constant 0 : i32
    %c0_i32_0 = arith.constant 0 : i32
    %c0_i32_1 = arith.constant 0 : i32
    return %arg0, %c0_i32, %arg1, %c0_i32_0 : i32, i32, i32, i32
  }
  func.func @transform_3(%arg0: i32, %arg1: i32) -> (i32, i32, i32, i32) {
    %c0_i32 = arith.constant 0 : i32
    %c0_i32_0 = arith.constant 0 : i32
    %c0_i32_1 = arith.constant 0 : i32
    return %arg0, %c0_i32, %arg1, %c0_i32_0 : i32, i32, i32, i32
  }
  func.func @transform_4(%arg0: i32, %arg1: i32) -> (i32, i32, i32, i32) {
    %c0_i32 = arith.constant 0 : i32
    %c0_i32_0 = arith.constant 0 : i32
    %c0_i32_1 = arith.constant 0 : i32
    return %arg0, %c0_i32, %arg1, %c0_i32_0 : i32, i32, i32, i32
  }
  func.func @transform_5(%arg0: i32, %arg1: i32) -> (i32, i32, i32, i32) {
    %c0_i32 = arith.constant 0 : i32
    %c0_i32_0 = arith.constant 0 : i32
    %c0_i32_1 = arith.constant 0 : i32
    return %arg0, %c0_i32, %arg1, %c0_i32_0 : i32, i32, i32, i32
  }
  func.func @transform_6(%arg0: i32, %arg1: i32) -> (i32, i32, i32, i32) {
    %c0_i32 = arith.constant 0 : i32
    %c0_i32_0 = arith.constant 0 : i32
    %c0_i32_1 = arith.constant 0 : i32
    return %arg0, %c0_i32, %arg1, %c0_i32_0 : i32, i32, i32, i32
  }
}

</mosaic_0001>

<bundles_post_ra>
// kernel: tpu_custom_call.1
= control target key start
LH: loop header
LB: loop body
LE: loop exit
PB: predicated region body
PF: predicated region fallthrough
CT: control target
= control target key end

     0   :  { %s1427_s0 = inlined_call_operand.hbm [shape: f32[2,4,2,128], index: 0, kind: input, shape index: {}]   ;;  %s1428_s1 = inlined_call_operand.hbm [shape: f32[2,4,2,128], index: 1, kind: input, shape index: {}]   ;;  %s1429_s2 = inlined_call_operand.vmem [shape: f32[2,1,2,128], index: 2, kind: input, shape index: {}]   ;;  %s1430_s3 = inlined_call_operand.vmem [shape: f32[2,1,2,128], index: 3, kind: input, shape index: {}]   ;;  %s1431_s4 = inlined_call_operand.hbm [shape: f32[2,4,2,128], index: 4, kind: output, shape index: {0}]   ;;  %s1432_s5 = inlined_call_operand.hbm [shape: f32[2,4,2,128], index: 5, kind: output, shape index: {1}]   ;;  %s1433_s6 = inlined_call_operand.hbm [shape: f32[2,1,2,128], index: 6, kind: output, shape index: {2}]  }
   0x1   :  { %1441 = sst [smem:[#allocation17_spill]] %s1427_s0 }
   0x2   :  { %1442 = sst [smem:[#allocation18_spill]] %s1428_s1 }
   0x3   :  { %12 = vsyncpa [#allocation3], 0 }
   0x4   :  { %14 = vsyncpa [#allocation3 + $0x1], 0 }
   0x5   :  { %15 = vsyncpa [#allocation6], 0 }
   0x6   :  { %17 = vsyncpa [#allocation6 + $0x1], 0 }
   0x7   :  { %18 = vsyncpa [#allocation4], 0 }
   0x8   :  { %20 = vsyncpa [#allocation4 + $0x1], 0 }
   0x9   :  { %21 = vsyncpa [#allocation9], 0 }
   0xa   :  { %23 = vsyncpa [#allocation9 + $0x1], 0  ;;  %s1076_s21 = smov 0   ;;  %s1078_s22 = smov 0  }
   0xb   :  { %s1080_s23 = smov 0   ;;  %s1082_s24 = smov 0  }
   0xc   :  { %s1084_s25 = smov 0   ;;  %s1086_s26 = smov 0  }
   0xd LB: > { %s1107_s27 = sadd.s32 4294967295, %s1029_s26   ;;  %s1434_s28 = sadd.s32 4294967294, %s1029_s26   ;;  %s1029_s26 = sphi %s1086_s26, %s29_s26   ;;  %s1025_s25 = sphi %s1084_s25, %s1470_s25   ;;  %s1021_s24 = sphi %s1082_s24, %s1469_s24   ;;  %s1017_s23 = sphi %s1080_s23, %s1468_s23   ;;  %s1013_s22 = sphi %s1078_s22, %s1467_s22   ;;  %s1009_s21 = sphi %s1076_s21, %s1466_s21  }
   0xe   : > { %s41_s29 = sadd.s32 1, %s1025_s25  ;;  %s50_s30 = sadd.s32 1, %s1017_s23 }
   0xf   : > { %p43_p0 = scmp.ge.s32.totalorder %s41_s29, 2  ;;  %p57_p1 = scmp.ne.s32.totalorder %s1017_s23, %s1013_s22 }
  0x10   : > { %p58_p2 = scmp.eq.s32.totalorder %s1029_s26, 0  ;;  %p63_p3 = scmp.ne.s32.totalorder %s1013_s22, %s1009_s21 }
  0x11   : > { %s1472_s29 = smov (%p43_p0, %s41_s29), 0  ;;  %p64_p5 = scmp.eq.s32.totalorder %s1107_s27, 0 }
  0x12   : > { %1443 = sst [smem:[#allocation15_spill]] %s1472_s29  ;;  %p1119_p4 = por %p58_p2, %p57_p1 }
  0x13   : > { %s45_s8 = ssub.s32 %s1025_s25, %s1472_s29  ;;  %p173_p6 = scmp.eq.s32.totalorder %s1107_s27, 1 }
  0x14   : > { %p48_p7 = scmp.eq.s32.totalorder %s45_s8, 0  ;;  %p1127_p8 = por %p64_p5, %p63_p3 }
  0x15   : > { %p1131_p9 = por %p173_p6, %p57_p1  ;;  %p179_p10 = scmp.eq.s32.totalorder %s1434_s28, 1 }
  0x16   : > { %s1445_s9 = scalar_select %p1127_p8, 1, 0 }
  0x17   : > { %s1446_s10 = scalar_select %p1131_p9, 1, 0 }
  0x18   : > { %s1138_s11 = scalar_select %p48_p7, %s1017_s23, %s50_s30  }
  0x19   : > { %p1140_p11 = por %p179_p10, %p63_p3  ;;  %p768_p13 = scmp.lt.s32.totalorder %s1029_s26, 2 }
  0x1a   : > { %1447 = sst [smem:[#allocation16_spill]] %s1138_s11  ;;  %s1147_s13 = sand.u32 1, %s1017_s23  }
  0x1b   : > { %s1448_s12 = scalar_select %p1140_p11, 1, 0 }
  0x1c   : > { %s1435_s14 = sshll.u32 %s1147_s13, 3  ;;  %s1436_s15 = sshll.u32 %s1025_s25, 7 }
  0x1d   : > { %s1449_s0 = sld [smem:[#allocation17_spill]]  ;;  %s259_s19 = scalar_lea.vmem [#allocation2], %s1435_s14 }
  0x1e   : > { %s267_s20 = sshll.u32 %s259_s19, 4  ;;  %p1164_p0 = pnand %p768_p13, %p1119_p4  ;;  %s1160_s20 = int_to_ptr.vmem [resolvable:$true] %s267_s20 }
  0x1f   : > { %s256_s8 = scalar_lea.sflag [#allocation3], %s1147_s13 }
  0x20   : > { %p825_p3 = pneg %p1164_p0 }
  0x23   : > { %s1156_s18 = scalar_lea.hbm %s1449_s0, %s1436_s15  ;;  %s828_s7 = scalar_lea.hbm %s1449_s0, 256 }
  0x24   : > { %s823_s16 = scalar_lea.hbm %s1156_s18, 128  ;;  %p829_p4 = scmp.lt.u32.totalorder %s1156_s18, %s1449_s0 }
  0x25   : > { %p824_p2 = scmp.ne.s32.totalorder %s1156_s18, %s823_s16  ;;  %p830_p7 = scmp.lt.u32.totalorder %s828_s7, %s823_s16 }
  0x26   : > { %p832_p13 = scmp.lt.u32.totalorder %s823_s16, %s1156_s18 }
  0x27   : > { %p826_p5 = pnand %p825_p3, %p824_p2  ;;  %p831_p10 = por %p830_p7, %p829_p4 }
  0x29   : > { %p827_p6 = pneg %p826_p5  ;;  %p833_p12 = por %p832_p13, %p831_p10 }
  0x2b   : > { %p834_p1 = pnand %p833_p12, %p827_p6 }
  0x2d   : > { %837 = shalt.err (!%p834_p1)
}
  0x2e   : > { %s838_s15 = scalar_lea.vmem %s1160_s20, 128  ;;  %s1031_s17 = smov [#allocation2]  }
  0x2f   : > { %p839_p2 = scmp.ne.s32.totalorder %s1160_s20, %s838_s15  ;;  %s843_s19 = sshll.u32 %s1031_s17, 4  ;;  %s844_s19 = int_to_ptr.vmem [resolvable:$false] %s843_s19 }
  0x30   : > { %s845_s28 = scalar_lea.vmem %s844_s19, 256  ;;  %p846_p9 = scmp.lt.s32.totalorder %s1160_s20, %s844_s19 }
  0x31   : > { %p841_p5 = pnand %p839_p2, %p825_p3  ;;  %p847_p4 = scmp.lt.s32.totalorder %s845_s28, %s838_s15 }
  0x33   : > { %p842_p11 = pneg %p841_p5  ;;  %p848_p7 = por %p847_p4, %p846_p9 }
  0x35   : > { %p849_p10 = pnand %p848_p7, %p842_p11 }
  0x37   : > { %852 = shalt.err (!%p849_p10)
}
  0x38   : > { %s1439_s14 = smov 32   ;;  %s1033_s16 = smov 2  }
  0x39   : > { %754 = dma.hbm_to_vmem [thread:$0]  (!%p1164_p0), %s1156_s18, 128, %s1160_s20, %s256_s8, %s1439_s14, %s1439_s14, %s1033_s16  }
  0x3a   : > { %p317_p9 = scmp.lt.s32.totalorder %s1029_s26, 3  ;;  %s1451_s15 = sshll.u32 %s1025_s25, 7 }
  0x3b   : > { %s1452_s1 = sld [smem:[#allocation18_spill]]  ;;  %p1453_p11 = scmp.ge.s32.totalorder %s1029_s26, 1 }
  0x3c   : > { %s1455_s0 = sshll.u32 %s1147_s13, 3  ;;  %s278_s18 = scalar_lea.sflag [#allocation6], %s1147_s13 }
  0x3d   : > { %p1210_p12 = pnand %p1453_p11, %p317_p9  ;;  %s281_s29 = scalar_lea.vmem [#allocation5], %s1455_s0 }
  0x3e   : > { %s289_s11 = sshll.u32 %s281_s29, 4  ;;  %s1216_s11 = int_to_ptr.vmem [resolvable:$true] %s289_s11 }
  0x41   : > { %s1206_s19 = scalar_lea.hbm %s1452_s1, %s1451_s15  ;;  %s858_s7 = scalar_lea.hbm %s1452_s1, 256 }
  0x42   : > { %s853_s20 = scalar_lea.hbm %s1206_s19, 128  ;;  %p859_p2 = scmp.lt.u32.totalorder %s1206_s19, %s1452_s1 }
  0x43   : > { %p854_p1 = scmp.ne.s32.totalorder %s1206_s19, %s853_s20  ;;  %p860_p5 = scmp.lt.u32.totalorder %s858_s7, %s853_s20 }
  0x44   : > { %p862_p7 = scmp.lt.u32.totalorder %s853_s20, %s1206_s19 }
  0x45   : > { %p856_p6 = pnand %p854_p1, %p825_p3  ;;  %p861_p4 = por %p860_p5, %p859_p2 }
  0x47   : > { %p857_p13 = pneg %p856_p6  ;;  %p863_p10 = por %p862_p7, %p861_p4 }
  0x49   : > { %p864_p9 = pnand %p863_p10, %p857_p13 }
  0x4b   : > { %867 = shalt.err (!%p864_p9)
}
  0x4c   : > { %s868_s0 = scalar_lea.vmem %s1216_s11, 128  ;;  %s1034_s29 = smov [#allocation5]  }
  0x4d   : > { %p869_p11 = scmp.ne.s32.totalorder %s1216_s11, %s868_s0  ;;  %s873_s8 = sshll.u32 %s1034_s29, 4  ;;  %s874_s8 = int_to_ptr.vmem [resolvable:$false] %s873_s8 }
  0x4e   : > { %s875_s14 = scalar_lea.vmem %s874_s8, 256  ;;  %p876_p8 = scmp.lt.s32.totalorder %s1216_s11, %s874_s8 }
  0x4f   : > { %p871_p1 = pnand %p869_p11, %p825_p3  ;;  %p877_p2 = scmp.lt.s32.totalorder %s875_s14, %s868_s0 }
  0x51   : > { %p872_p6 = pneg %p871_p1  ;;  %p878_p5 = por %p877_p2, %p876_p8 }
  0x53   : > { %p879_p4 = pnand %p878_p5, %p872_p6 }
  0x55   : > { %882 = shalt.err (!%p879_p4)
}
  0x56   : > { %s1456_s20 = smov 32   ;;  %321 = sbr.rel (%p1210_p12) target bundleno = 175 (0xaf), region = 36 }
  0x57   : > { %757 = dma.hbm_to_vmem [thread:$0]  (!%p1164_p0), %s1206_s19, 128, %s1216_s11, %s278_s18, %s1456_s20, %s1456_s20, %s1033_s16  }
  0x58   : > { %s1250_s15 = sand.u32 (!%p1210_p12), 1, %s1013_s22   ;;  %p1457_p8 = scmp.ne.s32.totalorder (!%p1210_p12), %s1445_s9, 0 }
  0x59   : > { %s1253_s7 = sshll.u32 (!%p1210_p12), %s1250_s15, 3  ;;  %s324_s30 = scalar_lea.sflag (!%p1210_p12), [#allocation3], %s1250_s15 }
  0x5a   : > { %s1257_s17 = scalar_lea.vmem (!%p1210_p12), [#allocation2], %s1253_s7 }
  0x5d   : > { %992 = dma.done.wait (%p1457_p8), %s324_s30, 128  }
  0x5e   : > { %994 = vsyncadd (%p1457_p8), %s324_s30, 4294967168  ;;  %s333_s11 = scalar_lea.sflag [#allocation6], %s1250_s15  ;;  %s336_s13 = scalar_lea.vmem [#allocation5], %s1253_s7 }
  0x5f   : > { %996 = dma.done.wait (%p1457_p8), %s333_s11, 128  }
  0x60   : > { %998 = vsyncadd (%p1457_p8), %s333_s11, 4294967168  ;;  %p394_p0 = scmp.lt.s32.totalorder %s1021_s24, 1  ;;  %s723_s16 = sshll.u32 %s1250_s15, 1  ;;  %v420_v2 = vld [vmem:[%s1257_s17] sm:$0x3]  ;;  %v1035_v17 = vmov 0.0  }
  0x61   : > { %s1273_s18 = scalar_lea.vmem [#allocation8], %s1253_s7  ;;  %s1282_s11 = scalar_lea.vmem [#allocation10], %s723_s16  ;;  %v424_v3 = vld [vmem:[%s336_s13] sm:$0x3]  ;;  %v421_v4 = vld [vmem:[%s1257_s17 + $0x2] sm:$0x3] }
  0x62   : > { %s395_s19 = scalar_select %p394_p0, %s1021_s24, 1  ;;  %v425_v7 = vld [vmem:[%s336_s13 + $0x2] sm:$0x3]  ;;  %v422_v8 = vld [vmem:[%s1257_s17 + $0x4] sm:$0x3] }
  0x63   : > { %s490_s0 = sshll.u32 %s1273_s18, 4  ;;  %s507_s1 = sshll.u32 %s1282_s11, 4  ;;  %v426_v10 = vld [vmem:[%s336_s13 + $0x4] sm:$0x3]  ;;  %v423_v11 = vld [vmem:[%s1257_s17 + $0x6] sm:$0x3]  ;;  %s1292_s0 = int_to_ptr.vmem [resolvable:$true] %s490_s0  ;;  %s1295_s1 = int_to_ptr.vmem [resolvable:$true] %s507_s1 }
  0x64   : > { %s724_s28 = sshll.u32 %s395_s19, 1  ;;  %v427_v12 = vld [vmem:[%s336_s13 + $0x6] sm:$0x3]  ;;  %s379_s16 = scalar_lea.vmem [#allocation7], %s1253_s7 }
  0x65   : > { %s400_s9 = scalar_lea.vmem %s1429_s2, %s724_s28  ;;  %s407_s30 = scalar_lea.vmem %s1430_s3, %s724_s28 }
  0x66   : > { %v408_v0 = vld [vmem:[%s400_s9] sm:$0x3]  ;;  %s473_s19 = sshll.u32 %s379_s16, 4  ;;  %s453_s28 = sand.u32 1, %s1107_s27   ;;  %s1306_s19 = int_to_ptr.vmem [resolvable:$true] %s473_s19 }
  0x67   : > { %v409_v1 = vld [vmem:[%s407_s30] sm:$0x3]  ;;  %vm410_vm0 = vcmp.gt.f32.partialorder %v408_v0, 0.5  ;;  %s739_s27 = sshll.u32 %s1021_s24, 7  ;;  %s883_s29 = scalar_lea.vmem %s1292_s0, 128 }
  0x68   : > { %vm411_vm1 = vcmp.gt.f32.partialorder %v409_v1, 0.5  ;;  %v416_v5 = vsel %vm410_vm0, 1.0, %v408_v0  ;;  %s1318_s13 = scalar_lea.hbm %s1432_s5, %s739_s27  ;;  %p884_p3 = scmp.ne.s32.totalorder %s1292_s0, %s883_s29 }
  0x69   : > { %v417_v6 = vsel %vm411_vm1, 1.0, %v409_v1  ;;  %vm1288_vm2 = vmand %vm410_vm0, %vm411_vm1  ;;  %p1460_p12 = scmp.ne.s32.totalorder %s1446_s10, 0  ;;  %s1036_s8 = smov [#allocation8]  }
  0x6a   : > { %vm419_vm3 = vcmp.ge.f32.partialorder %v416_v5, %v417_v6  ;;  %vm418_vm4 = vcmp.ge.f32.partialorder %v417_v6, %v416_v5  ;;  %v726_v18 = vsel %vm1288_vm2, 1.0, %v1035_v17  ;;  %s887_s9 = sshll.u32 %s1036_s8, 4  ;;  %s888_s9 = int_to_ptr.vmem [resolvable:$false] %s887_s9 }
  0x6b   : > { %v440_v13 = vsel %vm419_vm3, %v424_v3, %v420_v2  ;;  %v441_v14 = vsel %vm419_vm3, %v425_v7, %v421_v4  ;;  %v442_v15 = vsel %vm419_vm3, %v426_v10, %v422_v8  ;;  %v443_v16 = vsel %vm419_vm3, %v427_v12, %v423_v11  ;;  %415 = vst [vmem:[%s1282_s11] sm:$0x3] %v726_v18  ;;  %p885_p13 = pnand %p884_p3, %p1460_p12  ;;  %s889_s14 = scalar_lea.vmem %s888_s9, 256 }
  0x6c   : > { %444 = vst [vmem:[%s1273_s18] sm:$0x3] %v440_v13  ;;  %445 = vst [vmem:[%s1273_s18 + $0x2] sm:$0x3] %v441_v14  ;;  %v430_v19 = vsel %vm418_vm4, %v420_v2, %v424_v3  ;;  %v431_v20 = vsel %vm418_vm4, %v421_v4, %v425_v7  ;;  %v432_v21 = vsel %vm418_vm4, %v422_v8, %v426_v10  ;;  %p890_p10 = scmp.lt.s32.totalorder %s1292_s0, %s888_s9  ;;  %p891_p9 = scmp.lt.s32.totalorder %s889_s14, %s883_s29 }
  0x6d   : > { %446 = vst [vmem:[%s1273_s18 + $0x4] sm:$0x3] %v442_v15  ;;  %447 = vst [vmem:[%s1273_s18 + $0x6] sm:$0x3] %v443_v16  ;;  %v433_v22 = vsel %vm418_vm4, %v423_v11, %v427_v12  ;;  %s1320_s18 = scalar_lea.sflag [#allocation9], %s453_s28  ;;  %p886_p7 = pneg %p885_p13 }
  0x6e   : > { %434 = vst [vmem:[%s379_s16] sm:$0x3] %v430_v19  ;;  %435 = vst [vmem:[%s379_s16 + $0x2] sm:$0x3] %v431_v20  ;;  %p892_p11 = por %p891_p9, %p890_p10 }
  0x6f   : > { %436 = vst [vmem:[%s379_s16 + $0x4] sm:$0x3] %v432_v21  ;;  %437 = vst [vmem:[%s379_s16 + $0x6] sm:$0x3] %v433_v22 }
  0x70   : > { %p893_p1 = pnand %p892_p11, %p886_p7 }
  0x72   : > { %896 = shalt.err (!%p893_p1)
}
  0x73   : > { %s897_s20 = scalar_lea.hbm %s1318_s13, 128  ;;  %s901_s16 = scalar_lea.hbm %s1432_s5, 256 }
  0x74   : > { %p898_p6 = scmp.ne.s32.totalorder %s1318_s13, %s897_s20  ;;  %p902_p4 = scmp.lt.u32.totalorder %s1318_s13, %s1432_s5 }
  0x75   : > { %p903_p8 = scmp.lt.u32.totalorder %s901_s16, %s897_s20  ;;  %p905_p3 = scmp.lt.u32.totalorder %s897_s20, %s1318_s13 }
  0x76   : > { %p899_p2 = pnand %p898_p6, %p1460_p12 }
  0x77   : > { %p904_p0 = por %p903_p8, %p902_p4 }
  0x78   : > { %p900_p5 = pneg %p899_p2 }
  0x79   : > { %p906_p13 = por %p905_p3, %p904_p0 }
  0x7b   : > { %p907_p7 = pnand %p906_p13, %p900_p5 }
  0x7d   : > { %910 = shalt.err (!%p907_p7)
}
  0x7e   : > { %s1037_s17 = smov 32   ;;  %s1038_s29 = smov 2  }
  0x7f   : > { %746 = dma.vmem_to_hbm [thread:$0]  (%p1460_p12), %s1292_s0, 128, %s1318_s13, %s1320_s18, %s1037_s17, %s1037_s17, %s1038_s29  }
  0x80   : > { %s1352_s14 = scalar_lea.hbm %s1431_s4, %s739_s27  ;;  %s449_s20 = scalar_lea.sflag [#allocation4], %s1250_s15 }
  0x81   : > { %s911_s30 = scalar_lea.vmem %s1306_s19, 128  ;;  %s1039_s11 = smov [#allocation7]  }
  0x82   : > { %p912_p10 = scmp.ne.s32.totalorder %s1306_s19, %s911_s30  ;;  %s915_s16 = sshll.u32 %s1039_s11, 4  ;;  %s916_s16 = int_to_ptr.vmem [resolvable:$false] %s915_s16 }
  0x83   : > { %s917_s28 = scalar_lea.vmem %s916_s16, 256  ;;  %p918_p1 = scmp.lt.s32.totalorder %s1306_s19, %s916_s16 }
  0x84   : > { %p913_p9 = pnand %p912_p10, %p1460_p12  ;;  %p919_p6 = scmp.lt.s32.totalorder %s917_s28, %s911_s30 }
  0x86   : > { %p914_p11 = pneg %p913_p9  ;;  %p920_p2 = por %p919_p6, %p918_p1 }
  0x88   : > { %p921_p5 = pnand %p920_p2, %p914_p11 }
  0x8a   : > { %924 = shalt.err (!%p921_p5)
}
  0x8b   : > { %s925_s0 = scalar_lea.hbm %s1352_s14, 128  ;;  %s929_s7 = scalar_lea.hbm %s1431_s4, 256 }
  0x8c   : > { %p926_p4 = scmp.ne.s32.totalorder %s1352_s14, %s925_s0  ;;  %p930_p3 = scmp.lt.u32.totalorder %s1352_s14, %s1431_s4 }
  0x8d   : > { %p931_p13 = scmp.lt.u32.totalorder %s929_s7, %s925_s0  ;;  %p933_p10 = scmp.lt.u32.totalorder %s925_s0, %s1352_s14 }
  0x8e   : > { %p927_p8 = pnand %p926_p4, %p1460_p12 }
  0x8f   : > { %p932_p7 = por %p931_p13, %p930_p3 }
  0x90   : > { %p928_p0 = pneg %p927_p8 }
  0x91   : > { %p934_p9 = por %p933_p10, %p932_p7 }
  0x93   : > { %p935_p11 = pnand %p934_p9, %p928_p0 }
  0x95   : > { %938 = shalt.err (!%p935_p11)
}
  0x96   : > { %745 = dma.vmem_to_hbm [thread:$0]  (%p1460_p12), %s1306_s19, 128, %s1352_s14, %s449_s20, %s1037_s17, %s1037_s17, %s1038_s29  }
  0x97   : > { %s734_s30 = sshll.u32 %s1021_s24, 5  ;;  %s939_s0 = scalar_lea.vmem %s1295_s1, 32 }
  0x98   : > { %s505_s28 = scalar_lea.hbm %s1433_s6, %s734_s30  ;;  %p940_p1 = scmp.ne.s32.totalorder %s1295_s1, %s939_s0 }
  0x99   : > { %s1040_s27 = smov [#allocation10]  }
  0x9a   : > { %p941_p6 = pnand %p940_p1, %p1460_p12  ;;  %s943_s15 = sshll.u32 %s1040_s27, 4  ;;  %s944_s15 = int_to_ptr.vmem [resolvable:$false] %s943_s15 }
  0x9b   : > { %s945_s13 = scalar_lea.vmem %s944_s15, 64  ;;  %p946_p5 = scmp.lt.s32.totalorder %s1295_s1, %s944_s15 }
  0x9c   : > { %p942_p2 = pneg %p941_p6  ;;  %p947_p4 = scmp.lt.s32.totalorder %s945_s13, %s939_s0 }
  0x9e   : > { %p948_p8 = por %p947_p4, %p946_p5 }
  0xa0   : > { %p949_p0 = pnand %p948_p8, %p942_p2 }
  0xa2   : > { %952 = shalt.err (!%p949_p0)
}
  0xa3   : > { %s953_s19 = scalar_lea.hbm %s505_s28, 32  ;;  %s957_s29 = scalar_lea.hbm %s1433_s6, 64 }
  0xa4   : > { %p954_p3 = scmp.ne.s32.totalorder %s505_s28, %s953_s19  ;;  %p958_p10 = scmp.lt.u32.totalorder %s505_s28, %s1433_s6 }
  0xa5   : > { %p959_p9 = scmp.lt.u32.totalorder %s957_s29, %s953_s19  ;;  %p961_p1 = scmp.lt.u32.totalorder %s953_s19, %s505_s28 }
  0xa6   : > { %p955_p13 = pnand %p954_p3, %p1460_p12 }
  0xa7   : > { %p960_p11 = por %p959_p9, %p958_p10 }
  0xa8   : > { %p956_p7 = pneg %p955_p13 }
  0xa9   : > { %p962_p6 = por %p961_p1, %p960_p11 }
  0xab   : > { %p963_p2 = pnand %p962_p6, %p956_p7 }
  0xad   : > { %966 = shalt.err (!%p963_p2)
}
  0xae   : > { %747 = dma.vmem_to_hbm [thread:$0]  (%p1460_p12), %s1295_s1, 32, %s505_s28, %s1320_s18  }
  0xaf PF: > { %s519_s7 = sand.u32 1, %s1009_s21   ;;  %p1461_p5 = scmp.ne.s32.totalorder %s1448_s12, 0 }
  0xb0   : > { %p1462_p4 = scmp.ge.s32.totalorder %s1029_s26, 2  ;;  %s520_s8 = scalar_lea.sflag [#allocation4], %s519_s7 }
  0xb2   : > { %p759_p8 = pnand %p1462_p4, %p1461_p5 }
  0xb4   : > { %1000 = dma.done.wait (!%p759_p8), %s520_s8, 128  }
  0xb5   : > { %1002 = vsyncadd (!%p759_p8), %s520_s8, 4294967168  ;;  %s1463_s9 = sadd.s32 4294967294, %s1029_s26  }
  0xb6   : > { %s528_s30 = sand.u32 1, %s1463_s9  }
  0xb7   : > { %s529_s11 = scalar_lea.sflag [#allocation9], %s528_s30 }
  0xb8   : > { %1004 = dma.done.wait (!%p759_p8), %s529_s11, 160  }
  0xb9   : > { %1006 = vsyncadd (!%p759_p8), %s529_s11, 4294967136  ;;  %s29_s26 = sadd.s32 1, %s1029_s26   ;;  %s1464_s1 = sld [smem:[#allocation16_spill]] }
  0xba   : > { %p26_p12 = scmp.ge.s32.totalorder %s29_s26, 4   ;;  %s1465_s10 = sld [smem:[#allocation15_spill]] }
  0xbb   : > { %s1466_s21 = smov %s1013_s22  ;;  %s1467_s22 = smov %s1017_s23 }
  0xbc   : > { %s1469_s24 = smov %s1025_s25  ;;  %28 = sbr.rel (!%p26_p12) target bundleno = 13 (0xd), region = 132 }
  0xbf   : > { %s1468_s23 = smov %s1464_s1 }
  0xc0   : > { %s1470_s25 = smov %s1465_s10 }
  0xc3   :  { %543 = vsyncpa [#allocation3], 1 }
  0xc4   :  { %545 = vsyncpa [#allocation3 + $0x1], 1 }
  0xc5   :  { %546 = vsyncpa [#allocation6], 1 }
  0xc6   :  { %548 = vsyncpa [#allocation6 + $0x1], 1 }
  0xc7   :  { %549 = vsyncpa [#allocation4], 1 }
  0xc8   :  { %551 = vsyncpa [#allocation4 + $0x1], 1 }
  0xc9   :  { %552 = vsyncpa [#allocation9], 1 }
  0xca   :  { %554 = vsyncpa [#allocation9 + $0x1], 1 }

</bundles_post_ra>
